<compile_context>
chip_gen: v7x
topology: tpu7x:2x2x1
jax: 0.10.0
libtpu: 0.0.40
codegen_flags: <defaults>
</compile_context>

<pallas_src>
import jax
import jax.numpy as jnp
from jax.experimental import pallas as pl
from jax.experimental.pallas import tpu as pltpu

HID1 = 128        # fc1 out features (already lane-aligned)
HID2 = 64         # fc2 out features
H2P = 128         # lane-padded HID2 (padding lives only in VMEM-resident weights)
LANE = 128
SUBLANE = 8


def _round_up(v, m):
    return (v + m - 1) // m * m


def _tpu_generation_info():
    """Return (physical VMEM bytes, is_64MiB_part). Falls back to 128 MiB."""
    vmem = 128 * 1024 * 1024
    try:
        info = pltpu.get_tpu_info()
        v = getattr(info, "vmem_capacity_bytes", None)
        if v:
            vmem = int(v)
    except Exception:
        pass
    is_small_vmem = vmem <= 80 * 1024 * 1024   # v7x-class: 64 MiB / TensorCore
    return vmem, is_small_vmem


def _mlp_kernel(x_ref, w1_ref, w2_ref, w3_ref, b_ref, o_ref):
    # Packed biases along lanes: [ b1 (128) | b2_pad (128) | b3 (output_dim) ]
    # (the two 128-wide slices are lane-aligned; b3 is tiny).
    b1 = b_ref[:, 0:HID1]
    b2 = b_ref[:, HID1:HID1 + H2P]
    b3 = b_ref[:, HID1 + H2P:]

    cd = w1_ref.dtype  # compute dtype for MXU inputs (bf16 by default)

    # fc1 + ReLU: x streamed as f32, cast to bf16 in-register (VPU, hidden under DMA)
    x = x_ref[...].astype(cd)
    h1 = jnp.dot(x, w1_ref[...], preferred_element_type=jnp.float32)
    h1 = jnp.maximum(h1 + b1, 0.0).astype(cd)

    # fc2 + ReLU (lane-dense 128-wide thanks to zero-padded w2/b2)
    h2 = jnp.dot(h1, w2_ref[...], preferred_element_type=jnp.float32)
    h2 = jnp.maximum(h2 + b2, 0.0).astype(cd)

    # fc3 (no activation), written at true output width
    y = jnp.dot(h2, w3_ref[...], preferred_element_type=jnp.float32) + b3
    o_ref[...] = y.astype(o_ref.dtype)


def multi_output_regressor(x, params, *, block_b=None, compute_dtype=jnp.bfloat16):
    """Forward pass. x: (B, input_dim) float32. Returns {'pathways_pred': (B, output_dim)}."""
    w1, b1, w2, b2, w3, b3 = (
        params["w1"], params["b1"], params["w2"],
        params["b2"], params["w3"], params["b3"],
    )
    B, input_dim = x.shape
    output_dim = w3.shape[1]
    cd = compute_dtype
    cbytes = jnp.dtype(cd).itemsize

    # ---- weights: bf16; fc1 keeps K exact so x streams unpadded; HID2 lane-padded ----
    w1_c = w1.astype(cd)                                                  # (input_dim, 128)
    w2_p = jnp.zeros((HID1, H2P), cd).at[:, :HID2].set(w2.astype(cd))     # (128, 128)
    w3_p = jnp.zeros((H2P, output_dim), cd).at[:HID2, :].set(w3.astype(cd))  # (128, out)

    bias_cols = HID1 + H2P + output_dim
    bias = jnp.zeros((1, bias_cols), jnp.float32)
    bias = bias.at[:, 0:HID1].set(b1.astype(jnp.float32).reshape(1, HID1))
    bias = bias.at[:, HID1:HID1 + HID2].set(b2.astype(jnp.float32).reshape(1, HID2))
    bias = bias.at[:, HID1 + H2P:].set(b3.astype(jnp.float32).reshape(1, output_dim))

    weight_bytes = (w1_c.size + w2_p.size + w3_p.size) * cbytes

    # ---- VMEM footprint model (conservative: weights counted double-buffered) ----
    def footprint(bb):
        return (2 * bb * input_dim * 4                    # f32 x tile, double-buffered
                + 2 * bb * output_dim * 4                 # f32 out tile, double-buffered
                + 2 * weight_bytes                        # weights (worst case 2x)
                + 2 * SUBLANE * _round_up(bias_cols, LANE) * 4
                + bb * (2 * input_dim                     # bf16 x copy
                        + 6 * HID1 + 6 * H2P              # h1/h2 f32 + bf16 copies
                        + 4 * output_dim))                # y f32

    # ---- generation-aware budgets ----
    _, is_small_vmem = _tpu_generation_info()
    budget = (26 if is_small_vmem else 64) * 1024 * 1024
    vmem_cap = (48 if is_small_vmem else 100) * 1024 * 1024

    # ---- batch-tile selection ----
    if block_b is None:
        block_b = 1024 if is_small_vmem else 2048
        while block_b > 16 and footprint(block_b) > budget:
            block_b //= 2
        if is_small_vmem and B >= 64:
            # keep >= ~4 grid steps so the "parallel" batch axis can shard
            # across both v7x TensorCores
            block_b = min(block_b, max(16, _round_up(pl.cdiv(B, 4), 16)))

    if block_b >= B:
        block_b = B                       # single full-extent block (always legal)
        grid_b = 1
    else:
        block_b = max(16, _round_up(block_b, 16))
        grid_b = pl.cdiv(B, block_b)
        # even blocks out so the ragged edge block wastes as little as possible
        block_b = min(block_b, _round_up(pl.cdiv(B, grid_b), 16))
        grid_b = pl.cdiv(B, block_b)

    vmem_limit = int(min(vmem_cap, max(footprint(block_b) * 3 // 2, 16 * 1024 * 1024)))

    flops = 2 * B * (input_dim * HID1 + HID1 * H2P + H2P * output_dim)
    bytes_accessed = (B * input_dim * 4 + B * output_dim * 4
                      + weight_bytes + bias_cols * 4)

    out = pl.pallas_call(
        _mlp_kernel,
        out_shape=jax.ShapeDtypeStruct((B, output_dim), jnp.float32),
        grid_spec=pltpu.PrefetchScalarGridSpec(
            num_scalar_prefetch=0,
            grid=(grid_b,),
            in_specs=[
                # x: tiled over batch, full-extent (exact) feature dim, raw f32
                pl.BlockSpec((block_b, input_dim), lambda i: (i, 0)),
                # weights: full, VMEM-resident every step
                pl.BlockSpec((input_dim, HID1), lambda i: (0, 0)),
                pl.BlockSpec((HID1, H2P), lambda i: (0, 0)),
                pl.BlockSpec((H2P, output_dim), lambda i: (0, 0)),
                # packed biases
                pl.BlockSpec((1, bias_cols), lambda i: (0, 0)),
            ],
            out_specs=pl.BlockSpec((block_b, output_dim), lambda i: (i, 0)),
        ),
        compiler_params=pltpu.CompilerParams(
            dimension_semantics=("parallel",),
            vmem_limit_bytes=vmem_limit,
        ),
        cost_estimate=pl.CostEstimate(
            flops=flops, transcendentals=0, bytes_accessed=bytes_accessed),
    )(x, w1_c, w2_p, w3_p, bias)

    return {"pathways_pred": out.astype(x.dtype)}


def init_params(key, input_dim, output_dim):
    """Deterministic synthetic init (PyTorch-Linear-like uniform fan-in scaling)."""
    ks = jax.random.split(key, 6)

    def lin(kw, kb, fan_in, fan_out):
        bound = 1.0 / jnp.sqrt(jnp.float32(fan_in))
        w = jax.random.uniform(kw, (fan_in, fan_out), jnp.float32, -bound, bound)
        b = jax.random.uniform(kb, (1, fan_out), jnp.float32, -bound, bound)
        return w, b

    w1, b1 = lin(ks[0], ks[1], input_dim, HID1)
    w2, b2 = lin(ks[2], ks[3], HID1, HID2)
    w3, b3 = lin(ks[4], ks[5], HID2, output_dim)
    return {"w1": w1, "b1": b1, "w2": w2, "b2": b2, "w3": w3, "b3": b3}


def _reference(x, p, compute_dtype=jnp.bfloat16):
    """Plain-JAX reference using the same bf16-input / f32-accumulate recipe."""
    cd = compute_dtype
    h1 = jnp.dot(x.astype(cd), p["w1"].astype(cd),
                 preferred_element_type=jnp.float32) + p["b1"]
    h1 = jnp.maximum(h1, 0.0).astype(cd)
    h2 = jnp.dot(h1, p["w2"].astype(cd),
                 preferred_element_type=jnp.float32) + p["b2"]
    h2 = jnp.maximum(h2, 0.0).astype(cd)
    return jnp.dot(h2, p["w3"].astype(cd),
                   preferred_element_type=jnp.float32) + p["b3"]


if __name__ == "__main__":
    key = jax.random.PRNGKey(0)
    k_x, k_p, k_x2 = jax.random.split(key, 3)

    input_dim, output_dim = 32, 16
    params = init_params(k_p, input_dim, output_dim)

    # --- small batch: single full-extent block (grid = 1) ---
    B = 8
    x = jax.random.normal(k_x, (B, input_dim), dtype=jnp.float32)
    out = multi_output_regressor(x, params)
    y = jax.block_until_ready(out["pathways_pred"])
    y_ref = _reference(x, params)
    assert y.shape == (B, output_dim)
    assert jnp.allclose(y, y_ref, atol=2e-2, rtol=2e-2)

    # --- ragged batch: exercises cdiv grid + bounds-masked edge block ---
    B2 = 20
    x2 = jax.random.normal(k_x2, (B2, input_dim), dtype=jnp.float32)
    out2 = multi_output_regressor(x2, params, block_b=16)
    y2 = jax.block_until_ready(out2["pathways_pred"])
    y2_ref = _reference(x2, params)
    assert y2.shape == (B2, output_dim)
    assert jnp.allclose(y2, y2_ref, atol=2e-2, rtol=2e-2)

    print("KERNEL_OK")
</pallas_src>

<mosaic_0001>
module attributes {stable_mosaic.version = 11 : i64} {
  func.func @_mlp_kernel(%arg0: i32, %arg1: memref<8x32xf32, #tpu.memory_space<vmem>>, %arg2: memref<32x128xbf16, #tpu.memory_space<vmem>>, %arg3: memref<128x128xbf16, #tpu.memory_space<vmem>>, %arg4: memref<128x16xbf16, #tpu.memory_space<vmem>>, %arg5: memref<1x272xf32, #tpu.memory_space<vmem>>, %arg6: memref<8x16xf32, #tpu.memory_space<vmem>>) attributes {dimension_semantics = [#tpu.dimension_semantics<parallel>], iteration_bounds = array<i64: 1>, scalar_prefetch = 0 : i64, scratch_operands = 0 : i64, tpu.core_type = #tpu.core_type<tc>, window_params = [{transform_indices = @transform_0, window_bounds = array<i64: 8, 32>}, {pipeline_mode = #tpu.pipeline_mode<synchronous>, transform_indices = @transform_1, window_bounds = array<i64: 32, 128>}, {pipeline_mode = #tpu.pipeline_mode<synchronous>, transform_indices = @transform_2, window_bounds = array<i64: 128, 128>}, {pipeline_mode = #tpu.pipeline_mode<synchronous>, transform_indices = @transform_3, window_bounds = array<i64: 128, 16>}, {pipeline_mode = #tpu.pipeline_mode<synchronous>, transform_indices = @transform_4, window_bounds = array<i64: 1, 272>}, {transform_indices = @transform_5, window_bounds = array<i64: 8, 16>}]} {
    %c0 = arith.constant 0 : index
    %c0_0 = arith.constant 0 : index
    %0 = vector.load %arg5[%c0, %c0_0] : memref<1x272xf32, #tpu.memory_space<vmem>>, vector<1x128xf32>
    %c0_1 = arith.constant 0 : index
    %c128 = arith.constant 128 : index
    %1 = vector.load %arg5[%c0_1, %c128] : memref<1x272xf32, #tpu.memory_space<vmem>>, vector<1x128xf32>
    %c0_2 = arith.constant 0 : index
    %c256 = arith.constant 256 : index
    %2 = vector.load %arg5[%c0_2, %c256] : memref<1x272xf32, #tpu.memory_space<vmem>>, vector<1x16xf32>
    %c0_3 = arith.constant 0 : index
    %c0_4 = arith.constant 0 : index
    %3 = vector.load %arg1[%c0_3, %c0_4] : memref<8x32xf32, #tpu.memory_space<vmem>>, vector<8x32xf32>
    %4 = arith.truncf %3 : vector<8x32xf32> to vector<8x32xbf16>
    %c0_5 = arith.constant 0 : index
    %c0_6 = arith.constant 0 : index
    %5 = vector.load %arg2[%c0_5, %c0_6] : memref<32x128xbf16, #tpu.memory_space<vmem>>, vector<32x128xbf16>
    %cst = arith.constant dense<0.000000e+00> : vector<8x128xf32>
    %6 = tpu.matmul %4, %5, %cst {dimension_numbers = #tpu.dot_dimension_numbers<[1], [0], [0], [1], [0, 0, 1, 1], [], []>} : vector<8x32xbf16>, vector<32x128xbf16>, vector<8x128xf32> -> vector<8x128xf32>
    %7 = vector.broadcast %0 : vector<1x128xf32> to vector<8x128xf32>
    %8 = arith.addf %6, %7 : vector<8x128xf32>
    %cst_7 = arith.constant 0.000000e+00 : f32
    %9 = vector.broadcast %cst_7 : f32 to vector<8x128xf32>
    %10 = arith.maximumf %8, %9 : vector<8x128xf32>
    %11 = arith.truncf %10 : vector<8x128xf32> to vector<8x128xbf16>
    %c0_8 = arith.constant 0 : index
    %c0_9 = arith.constant 0 : index
    %12 = vector.load %arg3[%c0_8, %c0_9] : memref<128x128xbf16, #tpu.memory_space<vmem>>, vector<128x128xbf16>
    %cst_10 = arith.constant dense<0.000000e+00> : vector<8x128xf32>
    %13 = tpu.matmul %11, %12, %cst_10 {dimension_numbers = #tpu.dot_dimension_numbers<[1], [0], [0], [1], [0, 0, 1, 1], [], []>} : vector<8x128xbf16>, vector<128x128xbf16>, vector<8x128xf32> -> vector<8x128xf32>
    %14 = vector.broadcast %1 : vector<1x128xf32> to vector<8x128xf32>
    %15 = arith.addf %13, %14 : vector<8x128xf32>
    %cst_11 = arith.constant 0.000000e+00 : f32
    %16 = vector.broadcast %cst_11 : f32 to vector<8x128xf32>
    %17 = arith.maximumf %15, %16 : vector<8x128xf32>
    %18 = arith.truncf %17 : vector<8x128xf32> to vector<8x128xbf16>
    %c0_12 = arith.constant 0 : index
    %c0_13 = arith.constant 0 : index
    %19 = vector.load %arg4[%c0_12, %c0_13] : memref<128x16xbf16, #tpu.memory_space<vmem>>, vector<128x16xbf16>
    %cst_14 = arith.constant dense<0.000000e+00> : vector<8x16xf32>
    %20 = tpu.matmul %18, %19, %cst_14 {dimension_numbers = #tpu.dot_dimension_numbers<[1], [0], [0], [1], [0, 0, 1, 1], [], []>} : vector<8x128xbf16>, vector<128x16xbf16>, vector<8x16xf32> -> vector<8x16xf32>
    %21 = vector.broadcast %2 : vector<1x16xf32> to vector<8x16xf32>
    %22 = arith.addf %20, %21 : vector<8x16xf32>
    %c0_15 = arith.constant 0 : index
    %c0_16 = arith.constant 0 : index
    %23 = vector.load %arg6[%c0_15, %c0_16] : memref<8x16xf32, #tpu.memory_space<vmem>>, vector<8x16xf32>
    tpu.vector_store %arg6[%c0_15, %c0_16], %22 {strides = array<i32>} : memref<8x16xf32, #tpu.memory_space<vmem>>, vector<8x16xf32>,
    return
  }
  func.func @transform_0(%arg0: i32) -> (i32, i32) {
    %c0_i32 = arith.constant 0 : i32
    %c0_i32_0 = arith.constant 0 : i32
    return %arg0, %c0_i32 : i32, i32
  }
  func.func @transform_1(%arg0: i32) -> (i32, i32) {
    %c0_i32 = arith.constant 0 : i32
    %c0_i32_0 = arith.constant 0 : i32
    %c0_i32_1 = arith.constant 0 : i32
    return %c0_i32, %c0_i32_0 : i32, i32
  }
  func.func @transform_2(%arg0: i32) -> (i32, i32) {
    %c0_i32 = arith.constant 0 : i32
    %c0_i32_0 = arith.constant 0 : i32
    %c0_i32_1 = arith.constant 0 : i32
    return %c0_i32, %c0_i32_0 : i32, i32
  }
  func.func @transform_3(%arg0: i32) -> (i32, i32) {
    %c0_i32 = arith.constant 0 : i32
    %c0_i32_0 = arith.constant 0 : i32
    %c0_i32_1 = arith.constant 0 : i32
    return %c0_i32, %c0_i32_0 : i32, i32
  }
  func.func @transform_4(%arg0: i32) -> (i32, i32) {
    %c0_i32 = arith.constant 0 : i32
    %c0_i32_0 = arith.constant 0 : i32
    %c0_i32_1 = arith.constant 0 : i32
    return %c0_i32, %c0_i32_0 : i32, i32
  }
  func.func @transform_5(%arg0: i32) -> (i32, i32) {
    %c0_i32 = arith.constant 0 : i32
    %c0_i32_0 = arith.constant 0 : i32
    return %arg0, %c0_i32 : i32, i32
  }
}

</mosaic_0001>

<bundles_post_ra>
// kernel: tpu_custom_call.1
= control target key start
LH: loop header
LB: loop body
LE: loop exit
PB: predicated region body
PF: predicated region fallthrough
CT: control target
= control target key end

     0   :  { %10 = vsyncpa [#allocation3], 0  ;;  %s655_s0 = inlined_call_operand.vmem [shape: f32[8,32], index: 0, kind: input, shape index: {}]   ;;  %s656_s1 = inlined_call_operand.hbm [shape: bf16[32,128], index: 1, kind: input, shape index: {}]   ;;  %s657_s2 = inlined_call_operand.vmem [shape: bf16[128,128], index: 2, kind: input, shape index: {}]   ;;  %s658_s3 = inlined_call_operand.vmem [shape: bf16[128,16], index: 3, kind: input, shape index: {}]   ;;  %s659_s4 = inlined_call_operand.vmem [shape: f32[1,272], index: 4, kind: input, shape index: {}]   ;;  %s660_s5 = inlined_call_operand.hbm [shape: f32[8,16], index: 5, kind: output, shape index: {}]  }
   0x1   :  { %11 = vsyncpa [#allocation4], 0  ;;  %s511_s18 = smov [#allocation2]   ;;  %s463_s22 = scalar_lea.hbm %s656_s1, 256 }
   0x2   :  { %s19_s19 = sshll.u32 %s511_s18, 4  ;;  %p464_p0 = scmp.ne.s32.totalorder %s656_s1, %s463_s22  ;;  %s20_s19 = int_to_ptr.vmem [resolvable:$true] %s19_s19 }
   0x3   :  { %p467_p1 = scmp.lt.u32.totalorder %s463_s22, %s656_s1 }
   0x5   :  { %p469_p2 = pnand %p467_p1, %p464_p0 }
   0x7   :  { %472 = shalt.err (!%p469_p2)
}
   0x8   :  { %s473_s27 = scalar_lea.vmem %s20_s19, 256  ;;  %p478_p4 = scmp.lt.s32.totalorder %s20_s19, %s20_s19 }
   0x9   :  { %p474_p3 = scmp.ne.s32.totalorder %s20_s19, %s473_s27  ;;  %p479_p5 = scmp.lt.s32.totalorder %s473_s27, %s473_s27 }
   0xb   :  { %p480_p6 = por %p479_p5, %p478_p4 }
   0xd   :  { %p481_p7 = pnand %p480_p6, %p474_p3 }
   0xf   :  { %484 = shalt.err (!%p481_p7)
}
  0x10   :  { %s512_s28 = smov 64   ;;  %s513_s29 = smov 4  }
  0x11   :  { %25 = dma.hbm_to_vmem [thread:$0]  %s656_s1, 256, %s20_s19, [#allocation3], %s512_s28, %s512_s28, %s513_s29  }
  0x12   :  { %507 = dma.done.wait [#allocation3], 256  }
  0x13   :  { %508 = vsyncadd [#allocation3], 4294967040  ;;  %v514_v0 = vmov 0.0   ;;  %vm515_vm0 = vmmov 0   ;;  %v445_v1 = vld [vmem:[#allocation2] sm:$0xff]   ;;  %v446_v2 = vld [vmem:[#allocation2 + $0x8] sm:$0xff]  }
  0x14   :  { %391 = vmatprep.subr.bf16.mxu0 %v514_v0  ;;  %395 = vmatprep.mubr.msk.bf16.mxu0 %vm515_vm0, %v514_v0  ;;  %v39_v3 = vld [vmem:[%s655_s0] sm:$0xff]  ;;  %v448_v6 = vld [vmem:[%s657_s2 + $0x8] sm:$0xff]   ;;  %vm63_vm1 = vcmask 261120   ;;  %v449_v7 = vld [vmem:[%s657_s2 + $0x10] sm:$0xff]   ;;  %s516_s17 = smov [#allocation5]   ;;  %vm331_vm2 = vcmask 130048  }
  0x15   :  { %399 = vmatprep.subr.bf16.mxu1 %v514_v0  ;;  %415 = vmatprep.mubr.msk.bf16.mxu1 %vm515_vm0, %v514_v0  ;;  %v447_v4 = vld [vmem:[%s657_s2] sm:$0xff]   ;;  %v40_v5 = vpack.c.bf16 %v39_v3, %v39_v3  ;;  %v450_v8 = vld [vmem:[%s657_s2 + $0x18] sm:$0xff]   ;;  %v452_v10 = vld [vmem:[%s657_s2 + $0x28] sm:$0xff]   ;;  %s339_s18 = sshll.u32 %s516_s17, 4  ;;  %s340_s18 = int_to_ptr.vmem [resolvable:$true] %s339_s18 }
  0x16   :  { %392 = vmatpush3.bf16.msra.mxu0 %v445_v1  ;;  %400 = vmatpush3.bf16.msra.mxu1 %v447_v4  ;;  %v451_v9 = vld [vmem:[%s657_s2 + $0x20] sm:$0xff]   ;;  %v453_v11 = vld [vmem:[%s657_s2 + $0x30] sm:$0xff]   ;;  %v454_v12 = vld [vmem:[%s657_s2 + $0x38] sm:$0xff]   ;;  %p490_p9 = scmp.lt.s32.totalorder %s340_s18, %s340_s18 }
  0x17   :  { %393 = vmatprep.subr.bf16.mxu0 %v514_v0  ;;  %401 = vmatprep.subr.bf16.mxu1 %v514_v0  ;;  %v455_v13 = vld [vmem:[%s658_s3] sm:$0xff]   ;;  %v456_v14 = vld [vmem:[%s658_s3 + $0x8] sm:$0xff]   ;;  %v457_v15 = vld [vmem:[%s658_s3 + $0x10] sm:$0xff]  }
  0x18   :  { %v458_v16 = vld [vmem:[%s658_s3 + $0x18] sm:$0xff]   ;;  %v459_v17 = vld [vmem:[%s658_s3 + $0x20] sm:$0xff]   ;;  %v460_v18 = vld [vmem:[%s658_s3 + $0x28] sm:$0xff]  }
  0x19   :  { %v348_v19 = vld [vmem:[%s659_s4] ss:$0 sm:$0xff]  ;;  %v461_v27 = vld [vmem:[%s658_s3 + $0x30] sm:$0xff]   ;;  %v462_v28 = vld [vmem:[%s658_s3 + $0x38] sm:$0xff]   ;;  %s485_s3 = scalar_lea.vmem %s340_s18, 128 }
  0x1a   :  { %394 = vmatpush3.bf16.msra.mxu0 %v446_v2  ;;  %402 = vmatpush3.bf16.msra.mxu1 %v448_v6  ;;  %v352_v29 = vld [vmem:[%s659_s4 + $0x1] ss:$0 sm:$0xff]  ;;  %v361_v37 = vld [vmem:[%s659_s4 + $0x2] ss:$0 sm:$0xff]  ;;  %p486_p8 = scmp.ne.s32.totalorder %s340_s18, %s485_s3  ;;  %p491_p10 = scmp.lt.s32.totalorder %s485_s3, %s485_s3 }
  0x1b   :  { %419 = vmatprep.subr.bf16.mxu0 %v514_v0  ;;  %403 = vmatprep.subr.bf16.mxu1 %v514_v0 }
  0x1c   :  { %p492_p11 = por %p491_p10, %p490_p9 }
  0x1d   :  { %396 = vmatmul.mubr.msk.bf16.vlgmr.msra.gmra.mrb[0].mxu0 %vm63_vm1, %v40_v5 }
  0x1e   :  { %435 = vmatprep.mubr.msk.bf16.mxu0 %vm515_vm0, %v514_v0  ;;  %404 = vmatpush3.bf16.msra.mxu1 %v449_v7  ;;  %p493_p12 = pnand %p492_p11, %p486_p8 }
  0x1f   :  { %405 = vmatprep.subr.bf16.mxu1 %v514_v0  ;;  %420 = vmatpush3.bf16.msra.mxu0 %v455_v13 }
  0x20   :  { %421 = vmatprep.subr.bf16.mxu0 %v514_v0 }
  0x22   :  { %406 = vmatpush3.bf16.msra.mxu1 %v450_v8 }
  0x23   :  { %407 = vmatprep.subr.bf16.mxu1 %v514_v0  ;;  %422 = vmatpush3.bf16.msra.mxu0 %v456_v14 }
  0x24   :  { %423 = vmatprep.subr.bf16.mxu0 %v514_v0 }
  0x26   :  { %408 = vmatpush3.bf16.msra.mxu1 %v451_v9 }
  0x27   :  { %409 = vmatprep.subr.bf16.mxu1 %v514_v0  ;;  %424 = vmatpush3.bf16.msra.mxu0 %v457_v15 }
  0x28   :  { %425 = vmatprep.subr.bf16.mxu0 %v514_v0 }
  0x2a   :  { %410 = vmatpush3.bf16.msra.mxu1 %v452_v10 }
  0x2b   :  { %411 = vmatprep.subr.bf16.mxu1 %v514_v0  ;;  %426 = vmatpush3.bf16.msra.mxu0 %v458_v16 }
  0x2c   :  { %427 = vmatprep.subr.bf16.mxu0 %v514_v0 }
  0x2e   :  { %412 = vmatpush3.bf16.msra.mxu1 %v453_v11 }
  0x2f   :  { %413 = vmatprep.subr.bf16.mxu1 %v514_v0  ;;  %428 = vmatpush3.bf16.msra.mxu0 %v459_v17 }
  0x30   :  { %429 = vmatprep.subr.bf16.mxu0 %v514_v0 }
  0x32   :  { %414 = vmatpush3.bf16.msra.mxu1 %v454_v12 }
  0x33   :  { %430 = vmatpush3.bf16.msra.mxu0 %v460_v18 }
  0x34   :  { %431 = vmatprep.subr.bf16.mxu0 %v514_v0 }
  0x37   :  { %432 = vmatpush3.bf16.msra.mxu0 %v461_v27 }
  0x38   :  { %433 = vmatprep.subr.bf16.mxu0 %v514_v0 }
  0x3b   :  { %434 = vmatpush3.bf16.msra.mxu0 %v462_v28 }
  0xf0   :  { %v101_v20 = vpop.f32.mrb[0].mxu0 }
  0xf1   :  { %v102_v21 = vadd.f32 %v348_v19, %v101_v20  ;;  %v397_v22 = vpop.f32.mrb[1].mxu0 }
  0xf2   :  { %v104_v23 = vpop.f32.mrb[2].mxu0 }
  0xf3   :  { %v107_v24 = vmax.f32 %v102_v21, 0.0  ;;  %v398_v25 = vpop.f32.mrb[3].mxu0 }
  0xf5   :  { %v108_v26 = vpack.c.bf16 %v107_v24, %v107_v24 }
  0xf7   :  { %416 = vmatmul.mubr.bf16.vlgmr.msra.gmra.mrb[0].mxu1 %v108_v26 }
 0x1ca   :  { %v213_v30 = vpop.f32.mrb[0].mxu1 }
 0x1cb   :  { %v214_v31 = vadd.f32 %v352_v29, %v213_v30  ;;  %v417_v32 = vpop.f32.mrb[1].mxu1 }
 0x1cc   :  { %v216_v33 = vpop.f32.mrb[2].mxu1 }
 0x1cd   :  { %v219_v34 = vmax.f32 %v214_v31, 0.0  ;;  %v418_v35 = vpop.f32.mrb[3].mxu1 }
 0x1cf   :  { %v220_v36 = vpack.c.bf16 %v219_v34, %v219_v34 }
 0x1d1   :  { %436 = vmatmul.mubr.bf16.vlgmr.msra.gmra.mrb[4].mxu0 %v220_v36 }
 0x2a4   :  { %v325_v38 = vpop.f32.mrb[4].mxu0 }
 0x2a5   :  { %v326_v39 = vadd.f32 %v361_v37, %v325_v38  ;;  %v437_v40 = vpop.f32.mrb[5].mxu0 }
 0x2a6   :  { %v328_v41 = vpop.f32.mrb[6].mxu0 }
 0x2a7   :  { %v438_v42 = vpop.f32.mrb[7].mxu0  ;;  %332 = vst.msk [vmem:[#allocation5] sm:$0xff] %vm331_vm2, %v326_v39 }
 0x2a8   :  { %496 = shalt.err (!%p493_p12)
}
 0x2a9   :  { %s497_s4 = scalar_lea.hbm %s660_s5, 128 }
 0x2aa   :  { %p498_p13 = scmp.ne.s32.totalorder %s660_s5, %s497_s4  ;;  %p501_p0 = scmp.lt.u32.totalorder %s497_s4, %s660_s5 }
 0x2ac   :  { %p503_p1 = pnand %p501_p0, %p498_p13 }
 0x2ae   :  { %506 = shalt.err (!%p503_p1)
}
 0x2af   :  { %342 = dma.vmem_to_hbm [thread:$0]  %s340_s18, 128, %s660_s5, [#allocation4]  }
 0x2b0   :  { %509 = dma.done.wait [#allocation4], 128  }
 0x2b1   :  { %510 = vsyncadd [#allocation4], 4294967168 }
 0x2b2   :  { %346 = vsyncpa [#allocation3], 1 }
 0x2b3   :  { %347 = vsyncpa [#allocation4], 1 }

</bundles_post_ra>
